<compile_context>
chip_gen: v7x
topology: tpu7x:2x2x1
jax: 0.10.0
libtpu: 0.0.40
codegen_flags: <defaults>
</compile_context>

<pallas_src>
import functools
import numpy as np
import jax
import jax.numpy as jnp
from jax.experimental import pallas as pl
from jax.experimental.pallas import tpu as pltpu


def _round_up(x, m):
    return ((x + m - 1) // m) * m


def _vmem_budgets():
    """Return (x-slab budget for one double-buffered pair, vmem_limit cap)."""
    try:
        info = pltpu.get_tpu_info()
        cap = getattr(info, "vmem_capacity_bytes", None) or (64 << 20)
    except Exception:
        cap = 64 << 20
    if cap >= (100 << 20):              # v5e / v6e: 128 MiB physical VMEM
        return 24 << 20, 96 << 20
    return 8 << 20, 48 << 20            # v7x: 64 MiB per TensorCore


def _choose_tile_n(n, hw, c, budget_bytes, bytes_per_elem=4):
    """N-tile: as large as the (double-buffered) x-slab budget allows, but
    small enough that the grid has >= 4 steps (2 TCs x 2 pipelined steps)."""
    per_row = max(1, hw * c * bytes_per_elem)
    tn = budget_bytes // (2 * per_row)
    tn = max(8, min(int(tn), 2048))
    tn = (tn // 8) * 8                   # sublane-aligned tile
    min_steps = 4
    per_step = -(-n // min_steps)        # cdiv(n, min_steps)
    per_step = max(8, (per_step // 8) * 8)
    tn = max(8, min(tn, per_step))
    if tn >= n:
        return n                         # single full-extent block (tiny inputs)
    return tn


# ----------------------------------------------------------------------------
# Stage 1: avg-pool (optional) + fused cls/det Linear (+ fused cls softmax
# in eval mode).  Produces two lane-dense (TN, KP) outputs.
# ----------------------------------------------------------------------------
def _pool_linear_kernel(x_ref, w_ref, b_ref, cls_ref, det_ref, *,
                        pool: bool, kp: int, num_classes: int,
                        cls_softmax: bool):
    if pool:
        # x_ref: (TN, HW, C) -- HW on sublanes, C on lanes. AdaptiveAvgPool2d(1)
        # is a sublane sum; the 1/HW scale was folded into w_ref on the host.
        feat = jnp.sum(x_ref[...], axis=1)                    # (TN, C)
    else:
        feat = x_ref[...]                                     # (TN, C)
    logits = (jnp.dot(feat, w_ref[...], preferred_element_type=jnp.float32)
              + b_ref[...])                                   # (TN, 2*KP)
    cls_logit = logits[:, :kp]                                # lane-aligned slices
    det_logit = logits[:, kp:]

    if cls_softmax:
        # Eval: class softmax (dim=1) is purely row-local -> fuse it here and
        # save an HBM round-trip of the cls slab.  Mask lane-padded columns.
        col = jax.lax.broadcasted_iota(jnp.int32, cls_logit.shape, 1)
        cls_m = jnp.where(col < num_classes, cls_logit, jnp.float32(-1e30))
        cm = jnp.max(cls_m, axis=1, keepdims=True)
        ce = jnp.exp(cls_m - cm)
        cls_ref[...] = ce * pl.reciprocal(jnp.sum(ce, axis=1, keepdims=True),
                                          approx=True)
    else:
        cls_ref[...] = cls_logit
    det_ref[...] = det_logit


# ----------------------------------------------------------------------------
# Stage 2 (eval only): per-image (group) proposal softmax over dim 0 of the
# det logits.  Group boundaries are static Python ints, so this unrolls into
# G masked column reductions -- no one-hots, no MXU, per-GROUP max (stable).
# ----------------------------------------------------------------------------
def _group_softmax_kernel(det_ref, out_ref, *, group_bounds):
    det = det_ref[...]                                        # (N, KP)
    n = det.shape[0]
    row = jax.lax.broadcasted_iota(jnp.int32, (n, 1), 0)
    neg = jnp.float32(-1e30)

    rmax = jnp.full(det.shape, neg, jnp.float32)
    for lo, hi in group_bounds:
        mask = jnp.logical_and(row >= lo, row < hi)           # (N, 1)
        gmax = jnp.max(jnp.where(mask, det, neg), axis=0, keepdims=True)
        rmax = jnp.where(mask, gmax, rmax)

    de = jnp.exp(det - rmax)                                  # per-group max -> no underflow blow-up
    rsum = jnp.ones(det.shape, jnp.float32)
    for lo, hi in group_bounds:
        mask = jnp.logical_and(row >= lo, row < hi)
        gsum = jnp.sum(jnp.where(mask, de, 0.0), axis=0, keepdims=True)
        rsum = jnp.where(mask, gsum, rsum)

    out_ref[...] = de * pl.reciprocal(rsum, approx=True)


# ----------------------------------------------------------------------------
# Wrapper
# ----------------------------------------------------------------------------
def wsddn_predictor(x, params, proposal_lens, training=False):
    """Pallas implementation of WSDDNPredictor.forward.

    x: (N, C, H, W) or (N, C) float32; proposal_lens: python list of per-image
    proposal counts (sum == N). Returns (cls_logit, final_det_logit, None).
    """
    num_classes = params["cls_w"].shape[0]
    K = num_classes
    KP = _round_up(K, 128)                  # lane-dense class padding

    if x.ndim == 4:
        N, C, H, W = x.shape
        HW = H * W
        # NHWC flatten: C on the lane axis, HW on sublanes.
        x_in = jnp.transpose(x, (0, 2, 3, 1)).reshape(N, HW, C)
        pool = True
    else:
        N, C = x.shape
        HW = 1
        x_in = x
        pool = False

    # Fused + lane-padded weights: cols [0:KP) = cls, [KP:2KP) = det.  The
    # 1/HW pooling scale is folded into the weight (bias is post-pool -> not
    # scaled).
    scale = (1.0 / HW) if pool else 1.0
    wc = jnp.pad(params["cls_w"].T.astype(jnp.float32) * scale,
                 ((0, 0), (0, KP - K)))
    wd = jnp.pad(params["det_w"].T.astype(jnp.float32) * scale,
                 ((0, 0), (0, KP - K)))
    w_fused = jnp.concatenate([wc, wd], axis=1)               # (C, 2*KP)
    bc = jnp.pad(params["cls_b"].astype(jnp.float32), (0, KP - K))
    bd = jnp.pad(params["det_b"].astype(jnp.float32), (0, KP - K))
    b_fused = jnp.concatenate([bc, bd]).reshape(1, 2 * KP)    # (1, 2*KP)

    x_budget, vmem_cap = _vmem_budgets()
    TN = _choose_tile_n(N, HW, C, x_budget)
    grid = (pl.cdiv(N, TN),)

    if pool:
        x_spec = pl.BlockSpec((TN, HW, C), lambda i: (i, 0, 0))
    else:
        x_spec = pl.BlockSpec((TN, C), lambda i: (i, 0))
    w_spec = pl.BlockSpec((C, 2 * KP), lambda i: (0, 0))      # resident weights
    b_spec = pl.BlockSpec((1, 2 * KP), lambda i: (0, 0))
    cls_spec = pl.BlockSpec((TN, KP), lambda i: (i, 0))
    det_spec = pl.BlockSpec((TN, KP), lambda i: (i, 0))

    # VMEM estimate: x + both outputs double-buffered; resident weight/bias
    # are also counted double-buffered (Pallas still allocates 2 buffers for a
    # constant index_map).
    est = (2 * TN * HW * C * 4
           + 2 * 2 * TN * KP * 4
           + 2 * C * 2 * KP * 4
           + 2 * 2 * KP * 4
           + (2 << 20))
    vmem_limit = int(min(vmem_cap, max(16 << 20, est + (4 << 20))))

    cls_out, det_logit = pl.pallas_call(
        functools.partial(_pool_linear_kernel, pool=pool, kp=KP,
                          num_classes=K, cls_softmax=not training),
        out_shape=(jax.ShapeDtypeStruct((N, KP), jnp.float32),
                   jax.ShapeDtypeStruct((N, KP), jnp.float32)),
        grid=grid,
        in_specs=[x_spec, w_spec, b_spec],
        out_specs=(cls_spec, det_spec),
        compiler_params=pltpu.CompilerParams(
            dimension_semantics=("parallel",),
            vmem_limit_bytes=vmem_limit),
    )(x_in, w_fused, b_fused)

    if training:
        # Raw logits, no softmax; stage 2 is never built.
        return cls_out[:, :K], det_logit[:, :K], None

    # Eval: per-group proposal softmax on the det half only.
    G = len(proposal_lens)
    assert int(np.sum(proposal_lens)) == N
    offs = np.concatenate([[0], np.cumsum(np.asarray(proposal_lens, np.int64))])
    group_bounds = tuple((int(offs[g]), int(offs[g + 1])) for g in range(G))

    # Whole det slab resident in VMEM ((N, KP) f32 + a few temporaries) -- a
    # handful of MiB for realistic WSDDN sizes.  For extremely large N, tile
    # this over groups (PrefetchScalarGridSpec with SMEM group offsets).
    est2 = 8 * N * KP * 4 + (2 << 20)
    vmem2 = int(min(vmem_cap, max(16 << 20, est2)))
    vmem_spec = pl.BlockSpec(memory_space=pltpu.MemorySpace.VMEM)
    det_p = pl.pallas_call(
        functools.partial(_group_softmax_kernel, group_bounds=group_bounds),
        out_shape=jax.ShapeDtypeStruct((N, KP), jnp.float32),
        in_specs=[vmem_spec],
        out_specs=vmem_spec,
        compiler_params=pltpu.CompilerParams(vmem_limit_bytes=vmem2),
    )(det_logit)
    return cls_out[:, :K], det_p[:, :K], None


# ----------------------------------------------------------------------------
# Pure-JAX reference & synthetic init (mirror the PyTorch module)
# ----------------------------------------------------------------------------
def _ref_forward(x, params, proposal_lens, training):
    feat = x.mean(axis=(2, 3)) if x.ndim == 4 else x
    cls = feat @ params["cls_w"].T + params["cls_b"]
    det = feat @ params["det_w"].T + params["det_b"]
    if not training:
        cls = jax.nn.softmax(cls, axis=1)
        parts, off = [], 0
        for l in proposal_lens:
            parts.append(jax.nn.softmax(det[off:off + l], axis=0))
            off += l
        det = jnp.concatenate(parts, axis=0)
    return cls, det


def _init_params(key, in_channels, num_classes):
    # nn.init.normal_(weight, mean=0, std=0.001); bias = 0
    k1, k2 = jax.random.split(key)
    return {
        "cls_w": 0.001 * jax.random.normal(k1, (num_classes, in_channels), jnp.float32),
        "cls_b": jnp.zeros((num_classes,), jnp.float32),
        "det_w": 0.001 * jax.random.normal(k2, (num_classes, in_channels), jnp.float32),
        "det_b": jnp.zeros((num_classes,), jnp.float32),
    }


if __name__ == "__main__":
    key = jax.random.PRNGKey(0)
    kx, kparams = jax.random.split(key)

    N, C, H, W = 8, 32, 4, 4
    num_classes = 8
    proposal_lens = [5, 3]                  # two images: 5 + 3 = 8 proposals

    x = jax.random.normal(kx, (N, C, H, W), jnp.float32)
    params = _init_params(kparams, C, num_classes)

    # Eval (softmaxes) + training (raw logits) paths.
    cls_e, det_e, _ = wsddn_predictor(x, params, proposal_lens, training=False)
    cls_t, det_t, _ = wsddn_predictor(x, params, proposal_lens, training=True)
    # Pre-pooled 2-D input path (skips pooling entirely).
    feat2d = x.mean(axis=(2, 3))
    cls_2d, det_2d, _ = wsddn_predictor(feat2d, params, proposal_lens, training=False)
    # Stress test: one group's det logits sit ~150+ above the other's, which
    # would NaN a global-column-max softmax; the per-group max must stay finite.
    x_div = x.at[:5].multiply(3e4)
    cls_s, det_s, _ = wsddn_predictor(x_div, params, proposal_lens, training=False)
    jax.block_until_ready((cls_e, det_e, cls_t, det_t, cls_2d, det_2d, cls_s, det_s))

    ref_cls_e, ref_det_e = _ref_forward(x, params, proposal_lens, training=False)
    ref_cls_t, ref_det_t = _ref_forward(x, params, proposal_lens, training=True)
    ref_cls_s, ref_det_s = _ref_forward(x_div, params, proposal_lens, training=False)

    # Training logits: exact path, tight tolerance.
    np.testing.assert_allclose(np.asarray(cls_t), np.asarray(ref_cls_t), atol=1e-5, rtol=1e-5)
    np.testing.assert_allclose(np.asarray(det_t), np.asarray(ref_det_t), atol=1e-5, rtol=1e-5)
    # Eval probabilities use pl.reciprocal(approx=True): ~1e-3-accurate epilogue.
    np.testing.assert_allclose(np.asarray(cls_e), np.asarray(ref_cls_e), atol=1e-3, rtol=1e-3)
    np.testing.assert_allclose(np.asarray(det_e), np.asarray(ref_det_e), atol=1e-3, rtol=1e-3)
    np.testing.assert_allclose(np.asarray(cls_2d), np.asarray(ref_cls_e), atol=1e-3, rtol=1e-3)
    np.testing.assert_allclose(np.asarray(det_2d), np.asarray(ref_det_e), atol=1e-3, rtol=1e-3)
    # Divergent-group stress test: finite and matching the per-group reference.
    assert np.all(np.isfinite(np.asarray(det_s))) and np.all(np.isfinite(np.asarray(cls_s)))
    np.testing.assert_allclose(np.asarray(det_s), np.asarray(ref_det_s), atol=2e-3, rtol=1e-2)
    np.testing.assert_allclose(np.asarray(cls_s), np.asarray(ref_cls_s), atol=2e-3, rtol=1e-2)

    print("KERNEL_OK")
</pallas_src>

<mosaic_0001>
module attributes {stable_mosaic.version = 11 : i64} {
  func.func @_pool_linear_kernel(%arg0: i32, %arg1: memref<8x16x32xf32, #tpu.memory_space<vmem>>, %arg2: memref<32x256xf32, #tpu.memory_space<vmem>>, %arg3: memref<1x256xf32, #tpu.memory_space<vmem>>, %arg4: memref<8x128xf32, #tpu.memory_space<vmem>>, %arg5: memref<8x128xf32, #tpu.memory_space<vmem>>) attributes {dimension_semantics = [#tpu.dimension_semantics<parallel>], iteration_bounds = array<i64: 1>, scalar_prefetch = 0 : i64, scratch_operands = 0 : i64, tpu.core_type = #tpu.core_type<tc>, window_params = [{transform_indices = @transform_0, window_bounds = array<i64: 8, 16, 32>}, {pipeline_mode = #tpu.pipeline_mode<synchronous>, transform_indices = @transform_1, window_bounds = array<i64: 32, 256>}, {pipeline_mode = #tpu.pipeline_mode<synchronous>, transform_indices = @transform_2, window_bounds = array<i64: 1, 256>}, {transform_indices = @transform_3, window_bounds = array<i64: 8, 128>}, {transform_indices = @transform_4, window_bounds = array<i64: 8, 128>}]} {
    %c0 = arith.constant 0 : index
    %c0_0 = arith.constant 0 : index
    %c0_1 = arith.constant 0 : index
    %0 = vector.load %arg1[%c0, %c0_0, %c0_1] : memref<8x16x32xf32, #tpu.memory_space<vmem>>, vector<8x16x32xf32>
    %cst = arith.constant dense<0.000000e+00> : vector<8x32xf32>
    %1 = vector.multi_reduction <add>, %0, %cst [1] : vector<8x16x32xf32> to vector<8x32xf32>
    %c0_2 = arith.constant 0 : index
    %c0_3 = arith.constant 0 : index
    %2 = vector.load %arg2[%c0_2, %c0_3] : memref<32x256xf32, #tpu.memory_space<vmem>>, vector<32x256xf32>
    %cst_4 = arith.constant dense<0.000000e+00> : vector<8x256xf32>
    %3 = tpu.matmul %1, %2, %cst_4 {dimension_numbers = #tpu.dot_dimension_numbers<[1], [0], [0], [1], [0, 0, 1, 1], [], []>} : vector<8x32xf32>, vector<32x256xf32>, vector<8x256xf32> -> vector<8x256xf32>
    %c0_5 = arith.constant 0 : index
    %c0_6 = arith.constant 0 : index
    %4 = vector.load %arg3[%c0_5, %c0_6] : memref<1x256xf32, #tpu.memory_space<vmem>>, vector<1x256xf32>
    %5 = vector.broadcast %4 : vector<1x256xf32> to vector<8x256xf32>
    %6 = arith.addf %3, %5 : vector<8x256xf32>
    %7 = vector.extract_strided_slice %6 {offsets = [0, 0], sizes = [8, 128], strides = [1, 1]} : vector<8x256xf32> to vector<8x128xf32>
    %8 = vector.extract_strided_slice %6 {offsets = [0, 128], sizes = [8, 128], strides = [1, 1]} : vector<8x256xf32> to vector<8x128xf32>
    %9 = tpu.iota {dimensions = array<i32: 1>} : vector<8x128xi32>
    %c8_i32 = arith.constant 8 : i32
    %10 = vector.broadcast %c8_i32 : i32 to vector<8x128xi32>
    %11 = arith.cmpi slt, %9, %10 : vector<8x128xi32>
    %cst_7 = arith.constant -1.000000e+30 : f32
    %12 = vector.broadcast %cst_7 : f32 to vector<8x128xf32>
    %13 = arith.select %11, %7, %12 : vector<8x128xi1>, vector<8x128xf32>
    %cst_8 = arith.constant dense<0xFF800000> : vector<8xf32>
    %14 = vector.multi_reduction <maximumf>, %13, %cst_8 [1] : vector<8x128xf32> to vector<8xf32>
    %15 = vector.shape_cast %14 : vector<8xf32> to vector<8x1xf32>
    %16 = vector.broadcast %15 : vector<8x1xf32> to vector<8x128xf32>
    %17 = arith.subf %13, %16 : vector<8x128xf32>
    %18 = math.exp %17 : vector<8x128xf32>
    %cst_9 = arith.constant dense<0.000000e+00> : vector<8xf32>
    %19 = vector.multi_reduction <add>, %18, %cst_9 [1] : vector<8x128xf32> to vector<8xf32>
    %20 = vector.shape_cast %19 : vector<8xf32> to vector<8x1xf32>
    %21 = tpu.reciprocal %20 {approx = true} : vector<8x1xf32> -> vector<8x1xf32>
    %22 = vector.broadcast %21 : vector<8x1xf32> to vector<8x128xf32>
    %23 = arith.mulf %18, %22 : vector<8x128xf32>
    %c0_10 = arith.constant 0 : index
    %c0_11 = arith.constant 0 : index
    %24 = vector.load %arg4[%c0_10, %c0_11] : memref<8x128xf32, #tpu.memory_space<vmem>>, vector<8x128xf32>
    tpu.vector_store %arg4[%c0_10, %c0_11], %23 {strides = array<i32>} : memref<8x128xf32, #tpu.memory_space<vmem>>, vector<8x128xf32>,
    %c0_12 = arith.constant 0 : index
    %c0_13 = arith.constant 0 : index
    %25 = vector.load %arg5[%c0_12, %c0_13] : memref<8x128xf32, #tpu.memory_space<vmem>>, vector<8x128xf32>
    tpu.vector_store %arg5[%c0_12, %c0_13], %8 {strides = array<i32>} : memref<8x128xf32, #tpu.memory_space<vmem>>, vector<8x128xf32>,
    return
  }
  func.func @transform_0(%arg0: i32) -> (i32, i32, i32) {
    %c0_i32 = arith.constant 0 : i32
    %c0_i32_0 = arith.constant 0 : i32
    %c0_i32_1 = arith.constant 0 : i32
    return %arg0, %c0_i32, %c0_i32_0 : i32, i32, i32
  }
  func.func @transform_1(%arg0: i32) -> (i32, i32) {
    %c0_i32 = arith.constant 0 : i32
    %c0_i32_0 = arith.constant 0 : i32
    %c0_i32_1 = arith.constant 0 : i32
    return %c0_i32, %c0_i32_0 : i32, i32
  }
  func.func @transform_2(%arg0: i32) -> (i32, i32) {
    %c0_i32 = arith.constant 0 : i32
    %c0_i32_0 = arith.constant 0 : i32
    %c0_i32_1 = arith.constant 0 : i32
    return %c0_i32, %c0_i32_0 : i32, i32
  }
  func.func @transform_3(%arg0: i32) -> (i32, i32) {
    %c0_i32 = arith.constant 0 : i32
    %c0_i32_0 = arith.constant 0 : i32
    return %arg0, %c0_i32 : i32, i32
  }
  func.func @transform_4(%arg0: i32) -> (i32, i32) {
    %c0_i32 = arith.constant 0 : i32
    %c0_i32_0 = arith.constant 0 : i32
    return %arg0, %c0_i32 : i32, i32
  }
}

</mosaic_0001>

<bundles_post_ra>
// kernel: tpu_custom_call.1
= control target key start
LH: loop header
LB: loop body
LE: loop exit
PB: predicated region body
PF: predicated region fallthrough
CT: control target
= control target key end

     0   :  { %10 = vsyncpa [#allocation3], 0  ;;  %s518_s0 = inlined_call_operand.hbm [shape: f32[8,16,32], index: 0, kind: input, shape index: {}]   ;;  %s519_s1 = inlined_call_operand.hbm [shape: f32[32,256], index: 1, kind: input, shape index: {}]   ;;  %s520_s2 = inlined_call_operand.vmem [shape: f32[1,256], index: 2, kind: input, shape index: {}]   ;;  %s521_s3 = inlined_call_operand.hbm [shape: f32[8,128], index: 3, kind: output, shape index: {0}]   ;;  %s522_s4 = inlined_call_operand.hbm [shape: f32[8,128], index: 4, kind: output, shape index: {1}]  }
   0x1   :  { %11 = vsyncpa [#allocation6], 0 }
   0x2   :  { %12 = vsyncpa [#allocation4], 0 }
   0x3   :  { %13 = vsyncpa [#allocation9], 0  ;;  %s413_s15 = smov [#allocation2]   ;;  %s317_s19 = scalar_lea.hbm %s518_s0, 2048 }
   0x4   :  { %s19_s16 = sshll.u32 %s413_s15, 4  ;;  %p318_p0 = scmp.ne.s32.totalorder %s518_s0, %s317_s19  ;;  %s20_s16 = int_to_ptr.vmem [resolvable:$true] %s19_s16 }
   0x5   :  { %p321_p1 = scmp.lt.u32.totalorder %s317_s19, %s518_s0 }
   0x7   :  { %p323_p2 = pnand %p321_p1, %p318_p0 }
   0x9   :  { %326 = shalt.err (!%p323_p2)
}
   0xa   :  { %s327_s24 = scalar_lea.vmem %s20_s16, 2048  ;;  %p332_p4 = scmp.lt.s32.totalorder %s20_s16, %s20_s16 }
   0xb   :  { %p328_p3 = scmp.ne.s32.totalorder %s20_s16, %s327_s24  ;;  %p333_p5 = scmp.lt.s32.totalorder %s327_s24, %s327_s24 }
   0xd   :  { %p334_p6 = por %p333_p5, %p332_p4 }
   0xf   :  { %p335_p7 = pnand %p334_p6, %p328_p3 }
  0x11   :  { %338 = shalt.err (!%p335_p7)
}
  0x12   :  { %s414_s25 = smov 128   ;;  %s415_s26 = smov 8  }
  0x13   :  { %25 = dma.hbm_to_vmem [thread:$0]  %s518_s0, 2048, %s20_s16, [#allocation3], %s414_s25, %s414_s25, %s415_s26  }
  0x14   :  { %s416_s29 = smov [#allocation5]   ;;  %s339_s7 = scalar_lea.hbm %s519_s1, 1024 }
  0x15   :  { %s31_s30 = sshll.u32 %s416_s29, 4  ;;  %p340_p8 = scmp.ne.s32.totalorder %s519_s1, %s339_s7  ;;  %s32_s30 = int_to_ptr.vmem [resolvable:$true] %s31_s30 }
  0x16   :  { %p343_p9 = scmp.lt.u32.totalorder %s339_s7, %s519_s1 }
  0x18   :  { %p345_p10 = pnand %p343_p9, %p340_p8 }
  0x1a   :  { %348 = shalt.err (!%p345_p10)
}
  0x1b   :  { %s349_s12 = scalar_lea.vmem %s32_s30, 1024  ;;  %p354_p12 = scmp.lt.s32.totalorder %s32_s30, %s32_s30 }
  0x1c   :  { %p350_p11 = scmp.ne.s32.totalorder %s32_s30, %s349_s12  ;;  %p355_p13 = scmp.lt.s32.totalorder %s349_s12, %s349_s12 }
  0x1e   :  { %p356_p0 = por %p355_p13, %p354_p12 }
  0x20   :  { %p357_p1 = pnand %p356_p0, %p350_p11 }
  0x22   :  { %360 = shalt.err (!%p357_p1)
}
  0x23   :  { %s417_s0 = smov 256   ;;  %s418_s13 = smov 16  }
  0x24   :  { %37 = dma.hbm_to_vmem [thread:$0]  %s519_s1, 1024, %s32_s30, [#allocation6], %s417_s0, %s417_s0, %s418_s13  }
  0x25   :  { %405 = dma.done.wait [#allocation3], 2048  }
  0x26   :  { %406 = vsyncadd [#allocation3], 4294965248 }
  0x27   :  { %407 = dma.done.wait [#allocation6], 1024  }
  0x28   :  { %408 = vsyncadd [#allocation6], 4294966272  ;;  %v419_v0 = vmov 0.0   ;;  %v136_v1 = vld [vmem:[#allocation5 + $0x8] sm:$0xff]  ;;  %v138_v2 = vld [vmem:[#allocation5 + $0x18] sm:$0xff]  ;;  %vm62_vm0 = vcmask 261120  }
  0x29   :  { %243 = vmatprep.mubr.f32.mxu0 %v419_v0  ;;  %v135_v3 = vld [vmem:[#allocation5] sm:$0xff]  ;;  %v296_v4 = vpack.c.bf16 %v138_v2, %v136_v1  ;;  %v137_v5 = vld [vmem:[#allocation5 + $0x10] sm:$0xff]  ;;  %v140_v6 = vld [vmem:[#allocation5 + $0x28] sm:$0xff]  ;;  %vm163_vm1 = vcmask 1041409   ;;  %vm165_vm2 = vcmask 1042434   ;;  %vm167_vm3 = vcmask 1043459  }
  0x2a   :  { %v142_v7 = vld [vmem:[#allocation5 + $0x38] sm:$0xff]  ;;  %v298_v8 = vpack.c.bf16 %v137_v5, %v135_v3  ;;  %v139_v10 = vld [vmem:[#allocation5 + $0x20] sm:$0xff]  ;;  %v141_v11 = vld [vmem:[#allocation5 + $0x30] sm:$0xff]  ;;  %vm169_vm4 = vcmask 1044484   ;;  %vm171_vm5 = vcmask 1045509   ;;  %vm173_vm6 = vcmask 1046534  }
  0x2b   :  { %v300_v9 = vpack.c.bf16 %v142_v7, %v140_v6  ;;  %v46_v12 = vld [vmem:[#allocation2] sm:$0xff]  ;;  %297 = vmatprep.subr.bf16.mxu0 %v296_v4  ;;  %v47_v13 = vld [vmem:[#allocation2 + $0x8] sm:$0xff]  ;;  %v48_v14 = vld [vmem:[#allocation2 + $0x10] sm:$0xff]  ;;  %v302_v17 = vpack.c.bf16 %v141_v11, %v139_v10  ;;  %vm175_vm7 = vcmask 1047559   ;;  %s420_s17 = smov [#allocation8]  }
  0x2c   :  { %v49_v15 = vld [vmem:[#allocation2 + $0x18] sm:$0xff]  ;;  %v63_v16 = vsel %vm62_vm0, %v46_v12, 0.0  ;;  %299 = vmatpush1.bf16.msra.mxu0 %v298_v8  ;;  %v50_v18 = vld [vmem:[#allocation2 + $0x20] sm:$0xff]  ;;  %v51_v19 = vld [vmem:[#allocation2 + $0x28] sm:$0xff]  ;;  %v64_v21 = vsel %vm62_vm0, %v47_v13, 0.0  ;;  %v72_v22 = vsel %vm62_vm0, %v48_v14, 0.0 }
  0x2d   :  { %v52_v20 = vld [vmem:[#allocation2 + $0x30] sm:$0xff]  ;;  %v73_v23 = vsel %vm62_vm0, %v49_v15, 0.0  ;;  %301 = vmatprep.subr.bf16.mxu0 %v300_v9  ;;  %v53_v24 = vld [vmem:[#allocation2 + $0x38] sm:$0xff]  ;;  %v54_v25 = vld [vmem:[#allocation2 + $0x40] sm:$0xff]  ;;  %v65_v27 = vadd.f32 %v64_v21, %v63_v16  ;;  %v81_v29 = vsel %vm62_vm0, %v50_v18, 0.0  ;;  %v82_v30 = vsel %vm62_vm0, %v51_v19, 0.0 }
  0x2e   :  { %v55_v26 = vld [vmem:[#allocation2 + $0x48] sm:$0xff]  ;;  %v74_v28 = vadd.f32 %v73_v23, %v72_v22  ;;  %v56_v31 = vld [vmem:[#allocation2 + $0x50] sm:$0xff]  ;;  %v57_v32 = vld [vmem:[#allocation2 + $0x58] sm:$0xff]  ;;  %v83_v33 = vadd.f32 %v82_v30, %v81_v29  ;;  %v90_v34 = vsel %vm62_vm0, %v52_v20, 0.0  ;;  %v91_v35 = vsel %vm62_vm0, %v53_v24, 0.0 }
  0x2f   :  { %v99_v36 = vsel %vm62_vm0, %v54_v25, 0.0  ;;  %v58_v37 = vld [vmem:[#allocation2 + $0x60] sm:$0xff]  ;;  %v59_v38 = vld [vmem:[#allocation2 + $0x68] sm:$0xff]  ;;  %v66_v39 = vrot.slane %v65_v27, 4  ;;  %v92_v41 = vadd.f32 %v91_v35, %v90_v34  ;;  %v100_v42 = vsel %vm62_vm0, %v55_v26, 0.0  ;;  %v60_v47 = vld [vmem:[#allocation2 + $0x70] sm:$0xff] }
  0x30   :  { %v75_v40 = vrot.slane %v74_v28, 4  ;;  %303 = vmatpush1.bf16.msra.mxu0 %v302_v17  ;;  %v84_v43 = vrot.slane %v83_v33, 4  ;;  %v101_v44 = vadd.f32 %v100_v42, %v99_v36  ;;  %v108_v45 = vsel %vm62_vm0, %v56_v31, 0.0  ;;  %v61_v56 = vld [vmem:[#allocation2 + $0x78] sm:$0xff] }
  0x31   :  { %v109_v46 = vsel %vm62_vm0, %v57_v32, 0.0  ;;  %v67_v48 = vadd.f32 %v66_v39, %v65_v27  ;;  %v93_v50 = vrot.slane %v92_v41, 4  ;;  %v117_v54 = vsel %vm62_vm0, %v58_v37, 0.0 }
  0x32   :  { %v76_v49 = vadd.f32 %v75_v40, %v74_v28  ;;  %v110_v51 = vadd.f32 %v109_v46, %v108_v45  ;;  %v85_v52 = vadd.f32 %v84_v43, %v83_v33  ;;  %v102_v53 = vrot.slane %v101_v44, 4 }
  0x33   :  { %v118_v55 = vsel %vm62_vm0, %v59_v38, 0.0  ;;  %v68_v57 = vrot.slane %v67_v48, 2  ;;  %v94_v59 = vadd.f32 %v93_v50, %v92_v41  ;;  %v126_v0 = vsel %vm62_vm0, %v60_v47, 0.0  ;;  %v143_v47 = vld [vmem:[%s520_s2] sm:$0x3]  ;;  %s281_s2 = sshll.u32 %s420_s17, 4  ;;  %s282_s2 = int_to_ptr.vmem [resolvable:$true] %s281_s2 }
  0x34   :  { %v77_v58 = vrot.slane %v76_v49, 2  ;;  %v111_v60 = vrot.slane %v110_v51, 4  ;;  %v86_v61 = vrot.slane %v85_v52, 2  ;;  %v103_v62 = vadd.f32 %v102_v53, %v101_v44  ;;  %s361_s18 = scalar_lea.vmem %s282_s2, 128  ;;  %p366_p3 = scmp.lt.s32.totalorder %s282_s2, %s282_s2 }
  0x35   :  { %v119_v63 = vadd.f32 %v118_v55, %v117_v54  ;;  %v69_v1 = vadd.f32 %v68_v57, %v67_v48  ;;  %v95_v3 = vrot.slane %v94_v59, 2  ;;  %v127_v8 = vsel %vm62_vm0, %v61_v56, 0.0  ;;  %p362_p2 = scmp.ne.s32.totalorder %s282_s2, %s361_s18  ;;  %p367_p4 = scmp.lt.s32.totalorder %s361_s18, %s361_s18 }
  0x36   :  { %v78_v2 = vadd.f32 %v77_v58, %v76_v49  ;;  %v112_v4 = vadd.f32 %v111_v60, %v110_v51  ;;  %v87_v5 = vadd.f32 %v86_v61, %v85_v52  ;;  %v104_v6 = vrot.slane %v103_v62, 2 }
  0x37   :  { %v120_v7 = vrot.slane %v119_v63, 4  ;;  %v70_v9 = vrot.slane %v69_v1, 1  ;;  %v96_v11 = vadd.f32 %v95_v3, %v94_v59  ;;  %v128_v16 = vadd.f32 %v127_v8, %v126_v0  ;;  %p368_p5 = por %p367_p4, %p366_p3 }
  0x38   :  { %v79_v10 = vrot.slane %v78_v2, 1  ;;  %v113_v12 = vrot.slane %v112_v4, 2  ;;  %v88_v13 = vrot.slane %v87_v5, 1  ;;  %v105_v14 = vadd.f32 %v104_v6, %v103_v62 }
  0x39   :  { %v121_v15 = vadd.f32 %v120_v7, %v119_v63  ;;  %v71_v17 = vadd.f32 %v70_v9, %v69_v1  ;;  %v97_v19 = vrot.slane %v96_v11, 1  ;;  %v129_v24 = vrot.slane %v128_v16, 4  ;;  %p369_p6 = pnand %p368_p5, %p362_p2 }
  0x3a   :  { %v80_v18 = vadd.f32 %v79_v10, %v78_v2  ;;  %v114_v20 = vadd.f32 %v113_v12, %v112_v4  ;;  %v89_v21 = vadd.f32 %v88_v13, %v87_v5  ;;  %v106_v22 = vrot.slane %v105_v14, 1 }
  0x3b   :  { %v122_v23 = vrot.slane %v121_v15, 2  ;;  %v98_v25 = vadd.f32 %v97_v19, %v96_v11  ;;  %v130_v30 = vadd.f32 %v129_v24, %v128_v16  ;;  %v145_v44 = vlaneseq }
  0x3c   :  { %v115_v26 = vrot.slane %v114_v20, 1  ;;  %v164_v27 = vsel %vm163_vm1, %v80_v18, %v71_v17  ;;  %v107_v28 = vadd.f32 %v106_v22, %v105_v14 }
  0x3d   :  { %v123_v29 = vadd.f32 %v122_v23, %v121_v15  ;;  %v166_v31 = vsel %vm165_vm2, %v89_v21, %v164_v27  ;;  %v131_v35 = vrot.slane %v130_v30, 2  ;;  %v146_v45 = vshrl.u32 %v145_v44, 7 }
  0x3e   :  { %v116_v32 = vadd.f32 %v115_v26, %v114_v20  ;;  %v168_v33 = vsel %vm167_vm3, %v98_v25, %v166_v31  ;;  %v251_v49 = vand.u32 127, %v145_v44 }
  0x3f   :  { %v124_v34 = vrot.slane %v123_v29, 1  ;;  %v170_v36 = vsel %vm169_vm4, %v107_v28, %v168_v33  ;;  %v132_v38 = vadd.f32 %v131_v35, %v130_v30  ;;  %v147_v46 = vsub.s32 0, %v146_v45 }
  0x40   :  { %v172_v39 = vsel %vm171_vm5, %v116_v32, %v170_v36  ;;  %v151_v48 = vsub.s32 1, %v146_v45  ;;  %vm252_vm8 = vcmp.lt.s32.totalorder %v251_v49, 8 }
  0x41   :  { %v125_v37 = vadd.f32 %v124_v34, %v123_v29  ;;  %v133_v40 = vrot.slane %v132_v38, 1  ;;  %v148_v50 = vrot.slane %v143_v47, %v147_v46 }
  0x42   :  { %v152_v51 = vrot.slane %v143_v47, %v151_v48 }
  0x43   :  { %v174_v41 = vsel %vm173_vm6, %v125_v37, %v172_v39  ;;  %v134_v42 = vadd.f32 %v133_v40, %v132_v38 }
  0x45   :  { %v176_v43 = vsel %vm175_vm7, %v134_v42, %v174_v41 }
  0x46   :  { %295 = vmatmul.mubr.msk.f32.vlgmr.msra.gmra.mrb[0].mxu0 %vm62_vm0, %v176_v43 }
 0x119   :  { %v245_v52 = vpop.f32.mrb[0].mxu0 }
 0x11a   :  { %v246_v53 = vadd.f32 %v245_v52, %v148_v50  ;;  %v247_v54 = vpop.f32.mrb[1].mxu0 }
 0x11b   :  { %v248_v55 = vadd.f32 %v247_v54, %v152_v51 }
 0x11c   :  { %v253_v56 = vsel %vm252_vm8, %v246_v53, -1e+30 }
 0x11d   :  { %264 = vst [vmem:[#allocation8] sm:$0xff] %v248_v55  ;;  %254 = vmax.xlane.f32.xlu0 %v253_v56 }
 0x1aa   :  { %v255_v57 = vpop.xlane.xlu0 %254 }
 0x1ab   :  { %v256_v58 = vsub.f32 %v253_v56, %v255_v57 }
 0x1ad   :  { %v257_v59 = vmul.f32 1.442695, %v256_v58 }
 0x1af   :  { %313 = vpow2.f32 %v257_v59 }
 0x1b9   :  { %v314_v60 = vpop.eup %313 }
 0x1ba   :  { %259 = vadd.xlane.f32.xlu0 %v314_v60 }
 0x1bb   :  { %372 = shalt.err (!%p369_p6)
}
 0x1bc   :  { %s373_s21 = scalar_lea.hbm %s522_s4, 128 }
 0x1bd   :  { %p374_p7 = scmp.ne.s32.totalorder %s522_s4, %s373_s21  ;;  %p377_p8 = scmp.lt.u32.totalorder %s373_s21, %s522_s4 }
 0x1bf   :  { %p379_p9 = pnand %p377_p8, %p374_p7 }
 0x1c1   :  { %382 = shalt.err (!%p379_p9)
}
 0x1c2   :  { %284 = dma.vmem_to_hbm [thread:$0]  %s282_s2, 128, %s522_s4, [#allocation9]  }
 0x1c3   :  { %s421_s28 = smov [#allocation7]  }
 0x1c4   :  { %s271_s29 = sshll.u32 %s421_s28, 4  ;;  %s272_s29 = int_to_ptr.vmem [resolvable:$true] %s271_s29 }
 0x1c5   :  { %s383_s30 = scalar_lea.vmem %s272_s29, 128  ;;  %p388_p11 = scmp.lt.s32.totalorder %s272_s29, %s272_s29 }
 0x1c6   :  { %p384_p10 = scmp.ne.s32.totalorder %s272_s29, %s383_s30  ;;  %p389_p12 = scmp.lt.s32.totalorder %s383_s30, %s383_s30 }
 0x1c8   :  { %p390_p13 = por %p389_p12, %p388_p11 }
 0x1ca   :  { %p391_p0 = pnand %p390_p13, %p384_p10 }
 0x247   :  { %v260_v61 = vpop.xlane.xlu0 %259 }
 0x248   :  { %315 = vrcp.f32 %v260_v61 }
 0x252   :  { %v316_v62 = vpop.eup %315 }
 0x253   :  { %v262_v63 = vmul.f32 %v316_v62, %v314_v60 }
 0x255   :  { %263 = vst [vmem:[#allocation7] sm:$0xff] %v262_v63 }
 0x256   :  { %394 = shalt.err (!%p391_p0)
}
 0x257   :  { %s395_s7 = scalar_lea.hbm %s521_s3, 128 }
 0x258   :  { %p396_p1 = scmp.ne.s32.totalorder %s521_s3, %s395_s7  ;;  %p399_p2 = scmp.lt.u32.totalorder %s395_s7, %s521_s3 }
 0x25a   :  { %p401_p3 = pnand %p399_p2, %p396_p1 }
 0x25c   :  { %404 = shalt.err (!%p401_p3)
}
 0x25d   :  { %274 = dma.vmem_to_hbm [thread:$0]  %s272_s29, 128, %s521_s3, [#allocation4]  }
 0x25e   :  { %409 = dma.done.wait [#allocation4], 128  }
 0x25f   :  { %410 = vsyncadd [#allocation4], 4294967168 }
 0x260   :  { %411 = dma.done.wait [#allocation9], 128  }
 0x261   :  { %412 = vsyncadd [#allocation9], 4294967168 }
 0x262   :  { %291 = vsyncpa [#allocation3], 1 }
 0x263   :  { %292 = vsyncpa [#allocation6], 1 }
 0x264   :  { %293 = vsyncpa [#allocation4], 1 }
 0x265   :  { %294 = vsyncpa [#allocation9], 1 }

</bundles_post_ra>
